<compile_context>
chip_gen: v7x
topology: tpu7x:2x2x1
jax: 0.10.0
libtpu: 0.0.40
codegen_flags: <defaults>
</compile_context>

<pallas_src>
import functools

import jax
import jax.numpy as jnp
from jax.experimental import pallas as pl
from jax.experimental.pallas import tpu as pltpu

LANE = 128      # vreg lane width: feature dims padded to a multiple of this
SUBLANE = 8     # f32 sublane width: node count padded to a multiple of this


def _round_up(x, m):
    return ((x + m - 1) // m) * m


# ----------------------------- Pallas kernel ------------------------------ #
def _gcn_stack_kernel(a_ref, x_ref, w_ref, b_ref, o_ref, *, num_layers):
    """One grid step == one GCN layer: H <- relu?(A_hat @ (H @ W_l) + b_l).

    a_ref : (Np, Np)    bf16, resident in VMEM across all layers
    x_ref : (Np, Fp)    f32,  resident (only read at layer 0)
    w_ref : (1, Fp, Fp) bf16, streamed per layer (double-buffered prefetch)
    b_ref : (1, 1, Fp)  f32,  streamed per layer
    o_ref : (Np, Fp)    f32,  resident; holds running H, written to HBM once
    """
    l = pl.program_id(0)

    @pl.when(l == 0)
    def _():
        o_ref[...] = x_ref[...]

    h = o_ref[...]                                          # (Np, Fp) f32
    # Feature transform on the MXU (bf16 inputs, f32 accumulation).
    xw = jnp.dot(h.astype(jnp.bfloat16), w_ref[0],
                 preferred_element_type=jnp.float32)
    # Aggregation A_hat @ XW; bias + activation epilogue kept in f32
    # (no bf16 VPU path on v5e, and f32 epilogue is free filler anyway).
    agg = jnp.dot(a_ref[...], xw.astype(jnp.bfloat16),
                  preferred_element_type=jnp.float32)
    out = agg + b_ref[0]
    # ReLU on hidden layers only; Dropout is identity in eval mode.
    out = jnp.where(l < num_layers - 1, jnp.maximum(out, 0.0), out)
    o_ref[...] = out


def gcn_stack(a_hat, x_pad, w_stack, b_stack):
    """Fused multi-layer GCN forward. Returns final (Np, Fp) f32 features."""
    num_layers = int(w_stack.shape[0])
    n_pad = x_pad.shape[0]
    fp = x_pad.shape[1]

    flops = num_layers * (2 * n_pad * fp * fp + 2 * n_pad * n_pad * fp)
    bytes_accessed = (a_hat.size * 2 + x_pad.size * 4 + w_stack.size * 2
                      + b_stack.size * 4 + n_pad * fp * 4)

    # Resident A + X + out, plus double-buffered per-layer W and b.
    vmem_needed = (n_pad * n_pad * 2 + 2 * n_pad * fp * 4
                   + 2 * fp * fp * 2 + 2 * fp * 4)
    vmem_limit = int(min(max(2 * vmem_needed, 32 * 1024 * 1024),
                         64 * 1024 * 1024))

    kernel = functools.partial(_gcn_stack_kernel, num_layers=num_layers)
    return pl.pallas_call(
        kernel,
        out_shape=jax.ShapeDtypeStruct((n_pad, fp), jnp.float32),
        grid=(num_layers,),
        in_specs=[
            pl.BlockSpec((n_pad, n_pad), lambda l: (0, 0)),   # A_hat  (resident)
            pl.BlockSpec((n_pad, fp), lambda l: (0, 0)),      # X_pad  (resident)
            pl.BlockSpec((1, fp, fp), lambda l: (l, 0, 0)),   # W_l    (streamed)
            pl.BlockSpec((1, 1, fp), lambda l: (l, 0, 0)),    # b_l    (streamed)
        ],
        out_specs=pl.BlockSpec((n_pad, fp), lambda l: (0, 0)),  # running H
        compiler_params=pltpu.CompilerParams(
            dimension_semantics=("arbitrary",),   # layers are sequential
            vmem_limit_bytes=vmem_limit,
        ),
        cost_estimate=pl.CostEstimate(
            flops=int(flops), transcendentals=0,
            bytes_accessed=int(bytes_accessed)),
    )(a_hat, x_pad, w_stack, b_stack)


# ------------------------------ glue (JAX) --------------------------------- #
def build_normalized_adjacency(edge_index, num_nodes, edge_weight=None):
    """Dense D^{-1/2}(A+I)D^{-1/2}, mirroring GCNConv's gcn_norm.

    Duplicate (non-self-loop) edges are scatter-ADDED like PyG; one self loop
    per node is added (existing self-loop weights kept, else 1.0). Optional
    1-D edge_weight (edge_attr) is honoured.
    """
    src = edge_index[0].astype(jnp.int32)
    dst = edge_index[1].astype(jnp.int32)
    if edge_weight is None:
        edge_weight = jnp.ones(src.shape, jnp.float32)
    else:
        edge_weight = jnp.reshape(edge_weight, (-1,)).astype(jnp.float32)

    is_loop = src == dst
    a = jnp.zeros((num_nodes, num_nodes), jnp.float32)
    a = a.at[dst, src].add(jnp.where(is_loop, 0.0, edge_weight))

    # add_remaining_self_loops: every node gets exactly one self loop; keep the
    # weight of existing self loops (summed if duplicated), default 1.0.
    loop_sum = jnp.zeros((num_nodes,), jnp.float32).at[src].add(
        jnp.where(is_loop, edge_weight, 0.0))
    has_loop = jnp.zeros((num_nodes,), jnp.float32).at[src].add(
        is_loop.astype(jnp.float32)) > 0
    loop_w = jnp.where(has_loop, loop_sum, 1.0)
    a = a + jnp.diag(loop_w)

    deg = jnp.sum(a, axis=1)
    dinv = jnp.where(deg > 0, jax.lax.rsqrt(deg), 0.0)
    return a * dinv[:, None] * dinv[None, :]


class GNNPallas:
    """arch=1 GCN stack: [GCNConv -> ReLU -> Dropout]*len(nhids) -> GCNConv."""

    def __init__(self, nfeat, nhids, nclass, key):
        self.dims = [nfeat] + list(nhids) + [nclass]
        self.num_layers = len(self.dims) - 1
        # One common padded feature width so weights stack into (L, Fp, Fp).
        self.fpad = max(_round_up(d, LANE) for d in self.dims)

        w_list, b_list = [], []
        for li in range(self.num_layers):
            fin, fout = self.dims[li], self.dims[li + 1]
            key, wk = jax.random.split(key)
            # glorot-style deterministic init (synthetic, not a checkpoint)
            scale = jnp.sqrt(6.0 / (fin + fout))
            w = jax.random.uniform(wk, (fin, fout), jnp.float32, -scale, scale)
            wp = jnp.zeros((self.fpad, self.fpad), jnp.float32)
            wp = wp.at[:fin, :fout].set(w)
            bp = jnp.zeros((1, self.fpad), jnp.float32)
            w_list.append(wp)
            b_list.append(bp)
        # Weights in bf16 (MXU native); biases stay f32 for the epilogue.
        self.w_stack = jnp.stack(w_list).astype(jnp.bfloat16)   # (L, Fp, Fp)
        self.b_stack = jnp.stack(b_list)                         # (L, 1, Fp)

    def __call__(self, x, edge_index, edge_attr=None):
        n, f_in = x.shape
        n_pad = _round_up(n, SUBLANE)

        a = build_normalized_adjacency(edge_index, n, edge_attr)
        a_pad = jnp.zeros((n_pad, n_pad), jnp.float32).at[:n, :n].set(a)
        a_pad = a_pad.astype(jnp.bfloat16)

        x_pad = jnp.zeros((n_pad, self.fpad), jnp.float32)
        x_pad = x_pad.at[:n, :f_in].set(x.astype(jnp.float32))

        out = gcn_stack(a_pad, x_pad, self.w_stack, self.b_stack)
        # Strip node / feature padding.
        return out[:n, :self.dims[-1]]


# --------------------------------- main ------------------------------------ #
if __name__ == "__main__":
    N = 64        # nodes
    NFEAT = 32
    NHIDS = [32]
    NCLASS = 16
    E = 128       # directed edges

    key = jax.random.PRNGKey(0)
    key, kx, ke, kp = jax.random.split(key, 4)

    x = jax.random.normal(kx, (N, NFEAT), jnp.float32)
    edge_index = jax.random.randint(ke, (2, E), 0, N, dtype=jnp.int32)

    model = GNNPallas(NFEAT, NHIDS, NCLASS, kp)
    out = jax.block_until_ready(model(x, edge_index))

    assert out.shape == (N, NCLASS), out.shape
    assert bool(jnp.all(jnp.isfinite(out)))

    # Plain-JAX f32 reference (same weights / same A_hat) for a sanity check.
    a_ref = build_normalized_adjacency(edge_index, N)
    h = x.astype(jnp.float32)
    for li in range(model.num_layers):
        fin, fout = model.dims[li], model.dims[li + 1]
        w = model.w_stack[li][:fin, :fout].astype(jnp.float32)
        b = model.b_stack[li][:, :fout]
        h = a_ref @ (h @ w) + b
        if li < model.num_layers - 1:
            h = jnp.maximum(h, 0.0)
    max_err = float(jnp.max(jnp.abs(out - h)))
    assert jnp.allclose(out, h, atol=1e-1, rtol=1e-1), max_err

    print("KERNEL_OK")
</pallas_src>

<mosaic_0001>
module attributes {stable_mosaic.version = 11 : i64} {
  func.func @_gcn_stack_kernel(%arg0: i32, %arg1: memref<64x64xbf16, #tpu.memory_space<vmem>>, %arg2: memref<64x128xf32, #tpu.memory_space<vmem>>, %arg3: memref<1x128x128xbf16, #tpu.memory_space<vmem>>, %arg4: memref<1x1x128xf32, #tpu.memory_space<vmem>>, %arg5: memref<64x128xf32, #tpu.memory_space<vmem>>) attributes {dimension_semantics = [#tpu.dimension_semantics<arbitrary>], iteration_bounds = array<i64: 2>, scalar_prefetch = 0 : i64, scratch_operands = 0 : i64, tpu.core_type = #tpu.core_type<tc>, window_params = [{pipeline_mode = #tpu.pipeline_mode<synchronous>, transform_indices = @transform_0, window_bounds = array<i64: 64, 64>}, {pipeline_mode = #tpu.pipeline_mode<synchronous>, transform_indices = @transform_1, window_bounds = array<i64: 64, 128>}, {transform_indices = @transform_2, window_bounds = array<i64: 1, 128, 128>}, {transform_indices = @transform_3, window_bounds = array<i64: 1, 1, 128>}, {pipeline_mode = #tpu.pipeline_mode<synchronous>, transform_indices = @transform_4, window_bounds = array<i64: 64, 128>}]} {
    %c0_i32 = arith.constant 0 : i32
    %0 = arith.cmpi eq, %arg0, %c0_i32 : i32
    %1 = arith.extui %0 : i1 to i32
    %c0_i32_0 = arith.constant 0 : i32
    %2 = arith.cmpi ne, %1, %c0_i32_0 : i32
    scf.if %2 {
      %c0_14 = arith.constant 0 : index
      %c0_15 = arith.constant 0 : index
      %20 = vector.load %arg2[%c0_14, %c0_15] : memref<64x128xf32, #tpu.memory_space<vmem>>, vector<64x128xf32>
      %c0_16 = arith.constant 0 : index
      %c0_17 = arith.constant 0 : index
      %21 = vector.load %arg5[%c0_16, %c0_17] : memref<64x128xf32, #tpu.memory_space<vmem>>, vector<64x128xf32>
      tpu.vector_store %arg5[%c0_16, %c0_17], %20 {strides = array<i32>} : memref<64x128xf32, #tpu.memory_space<vmem>>, vector<64x128xf32>,
    } else {
    }
    %c0 = arith.constant 0 : index
    %c0_1 = arith.constant 0 : index
    %3 = vector.load %arg5[%c0, %c0_1] : memref<64x128xf32, #tpu.memory_space<vmem>>, vector<64x128xf32>
    %4 = arith.truncf %3 : vector<64x128xf32> to vector<64x128xbf16>
    %c0_2 = arith.constant 0 : index
    %c0_3 = arith.constant 0 : index
    %c0_4 = arith.constant 0 : index
    %5 = vector.load %arg3[%c0_2, %c0_3, %c0_4] : memref<1x128x128xbf16, #tpu.memory_space<vmem>>, vector<1x128x128xbf16>
    %6 = vector.shape_cast %5 : vector<1x128x128xbf16> to vector<128x128xbf16>
    %cst = arith.constant dense<0.000000e+00> : vector<64x128xf32>
    %7 = tpu.matmul %4, %6, %cst {dimension_numbers = #tpu.dot_dimension_numbers<[1], [0], [0], [1], [0, 0, 1, 1], [], []>} : vector<64x128xbf16>, vector<128x128xbf16>, vector<64x128xf32> -> vector<64x128xf32>
    %c0_5 = arith.constant 0 : index
    %c0_6 = arith.constant 0 : index
    %8 = vector.load %arg1[%c0_5, %c0_6] : memref<64x64xbf16, #tpu.memory_space<vmem>>, vector<64x64xbf16>
    %9 = arith.truncf %7 : vector<64x128xf32> to vector<64x128xbf16>
    %cst_7 = arith.constant dense<0.000000e+00> : vector<64x128xf32>
    %10 = tpu.matmul %8, %9, %cst_7 {dimension_numbers = #tpu.dot_dimension_numbers<[1], [0], [0], [1], [0, 0, 1, 1], [], []>} : vector<64x64xbf16>, vector<64x128xbf16>, vector<64x128xf32> -> vector<64x128xf32>
    %c0_8 = arith.constant 0 : index
    %c0_9 = arith.constant 0 : index
    %c0_10 = arith.constant 0 : index
    %11 = vector.load %arg4[%c0_8, %c0_9, %c0_10] : memref<1x1x128xf32, #tpu.memory_space<vmem>>, vector<1x1x128xf32>
    %12 = vector.shape_cast %11 : vector<1x1x128xf32> to vector<1x128xf32>
    %13 = vector.broadcast %12 : vector<1x128xf32> to vector<64x128xf32>
    %14 = arith.addf %10, %13 : vector<64x128xf32>
    %c1_i32 = arith.constant 1 : i32
    %15 = arith.cmpi slt, %arg0, %c1_i32 : i32
    %cst_11 = arith.constant 0.000000e+00 : f32
    %16 = vector.broadcast %cst_11 : f32 to vector<64x128xf32>
    %17 = arith.maximumf %14, %16 : vector<64x128xf32>
    %18 = arith.select %15, %17, %14 : vector<64x128xf32>
    %c0_12 = arith.constant 0 : index
    %c0_13 = arith.constant 0 : index
    %19 = vector.load %arg5[%c0_12, %c0_13] : memref<64x128xf32, #tpu.memory_space<vmem>>, vector<64x128xf32>
    tpu.vector_store %arg5[%c0_12, %c0_13], %18 {strides = array<i32>} : memref<64x128xf32, #tpu.memory_space<vmem>>, vector<64x128xf32>,
    return
  }
  func.func @transform_0(%arg0: i32) -> (i32, i32) {
    %c0_i32 = arith.constant 0 : i32
    %c0_i32_0 = arith.constant 0 : i32
    %c0_i32_1 = arith.constant 0 : i32
    return %c0_i32, %c0_i32_0 : i32, i32
  }
  func.func @transform_1(%arg0: i32) -> (i32, i32) {
    %c0_i32 = arith.constant 0 : i32
    %c0_i32_0 = arith.constant 0 : i32
    %c0_i32_1 = arith.constant 0 : i32
    return %c0_i32, %c0_i32_0 : i32, i32
  }
  func.func @transform_2(%arg0: i32) -> (i32, i32, i32) {
    %c0_i32 = arith.constant 0 : i32
    %c0_i32_0 = arith.constant 0 : i32
    %c0_i32_1 = arith.constant 0 : i32
    return %arg0, %c0_i32, %c0_i32_0 : i32, i32, i32
  }
  func.func @transform_3(%arg0: i32) -> (i32, i32, i32) {
    %c0_i32 = arith.constant 0 : i32
    %c0_i32_0 = arith.constant 0 : i32
    %c0_i32_1 = arith.constant 0 : i32
    return %arg0, %c0_i32, %c0_i32_0 : i32, i32, i32
  }
  func.func @transform_4(%arg0: i32) -> (i32, i32) {
    %c0_i32 = arith.constant 0 : i32
    %c0_i32_0 = arith.constant 0 : i32
    %c0_i32_1 = arith.constant 0 : i32
    return %c0_i32, %c0_i32_0 : i32, i32
  }
}

</mosaic_0001>

<bundles_post_ra>
// kernel: tpu_custom_call.1
= control target key start
LH: loop header
LB: loop body
LE: loop exit
PB: predicated region body
PF: predicated region fallthrough
CT: control target
= control target key end

     0   :  { %9 = vsyncpa [#allocation3], 0  ;;  %s1272_s0 = inlined_call_operand.hbm [shape: bf16[64,64], index: 0, kind: input, shape index: {}]   ;;  %s1273_s1 = inlined_call_operand.hbm [shape: f32[64,128], index: 1, kind: input, shape index: {}]   ;;  %s1274_s2 = inlined_call_operand.hbm [shape: bf16[2,128,128], index: 2, kind: input, shape index: {}]   ;;  %s1275_s3 = inlined_call_operand.vmem [shape: f32[2,1,128], index: 3, kind: input, shape index: {}]   ;;  %s1276_s4 = inlined_call_operand.hbm [shape: f32[64,128], index: 4, kind: output, shape index: {}]  }
   0x1   :  { %10 = vsyncpa [#allocation6], 0 }
   0x2   :  { %11 = vsyncpa [#allocation4], 0  ;;  %s1014_s15 = smov 0   ;;  %s1016_s16 = smov 0  }
   0x3   :  { %s1018_s17 = smov 0   ;;  %s1020_s18 = smov 0  }
   0x4 LB: > { %s1033_s19 = sadd.s32 4294967295, %s977_s18   ;;  %s1036_s20 = sadd.s32 1, %s977_s18   ;;  %s977_s18 = sphi %s1020_s18, %s1299_s18   ;;  %s973_s17 = sphi %s1018_s17, %s1298_s17   ;;  %s969_s16 = sphi %s1016_s16, %s1297_s16   ;;  %s965_s15 = sphi %s1014_s15, %s1296_s15  }
   0x5   : > { %s63_s21 = ssub.s32 %s977_s18, %s1036_s20  ;;  %s66_s22 = sadd.s32 1, %s973_s17 }
   0x6   : > { %p64_p0 = scmp.eq.s32.totalorder %s63_s21, 0  ;;  %p73_p1 = scmp.ne.s32.totalorder %s973_s17, %s969_s16 }
   0x7   : > { %p74_p2 = scmp.eq.s32.totalorder %s977_s18, 0  ;;  %p79_p3 = scmp.ne.s32.totalorder %s969_s16, %s965_s15 }
   0x8   : > { %s1046_s23 = scalar_select %p64_p0, %s973_s17, %s66_s22  }
   0x9   : > { %p1048_p4 = por %p74_p2, %p73_p1  ;;  %p1277_p5 = scmp.eq.s32.totalorder %s1033_s19, 0 }
   0xa   : > { %p640_p6 = scmp.ge.s32.totalorder %s977_s18, 1  ;;  %p137_p7 = scmp.lt.s32.totalorder %s977_s18, 3 }
   0xb   : > { %p1057_p8 = por %p1277_p5, %p79_p3  ;;  %s979_s27 = smov [#allocation2]  }
   0xc   : > { %p1062_p10 = pnand %p640_p6, %p137_p7  ;;  %s149_s28 = sshll.u32 %s979_s27, 4  ;;  %s150_s28 = int_to_ptr.vmem [resolvable:$true] %s149_s28 }
   0xd   : > { %s1282_s25 = scalar_select %p1057_p8, 1, 0 }
   0xe   : > { %s1283_s26 = scalar_select %p1062_p10, 1, 0 }
   0xf   : > { %p748_p11 = pneg %p1062_p10  ;;  %p761_p13 = scmp.lt.s32.totalorder %s977_s18, 2 }
  0x10   : > { %s819_s7 = scalar_lea.hbm %s1272_s0, 512 }
  0x11   : > { %p1070_p12 = pnand %p748_p11, %p1277_p5  ;;  %p1077_p0 = pnand %p761_p13, %p1048_p4 }
  0x12   : > { %p820_p1 = scmp.ne.s32.totalorder %s1272_s0, %s819_s7  ;;  %p826_p4 = scmp.lt.u32.totalorder %s819_s7, %s1272_s0 }
  0x13   : > { %s1285_s30 = scalar_select %p1077_p0, 1, 0 }
  0x14   : > { %p821_p2 = pneg %p1070_p12 }
  0x16   : > { %p822_p3 = pnand %p821_p2, %p820_p1 }
  0x18   : > { %p823_p6 = pneg %p822_p3 }
  0x1a   : > { %p828_p7 = pnand %p826_p4, %p823_p6 }
  0x1c   : > { %831 = shalt.err (!%p828_p7)
}
  0x1d   : > { %s832_s12 = scalar_lea.vmem %s150_s28, 512  ;;  %p840_p5 = scmp.lt.s32.totalorder %s150_s28, %s150_s28 }
  0x1e   : > { %p833_p11 = scmp.ne.s32.totalorder %s150_s28, %s832_s12  ;;  %p841_p8 = scmp.lt.s32.totalorder %s832_s12, %s832_s12 }
  0x20   : > { %p835_p13 = pnand %p833_p11, %p821_p2  ;;  %p842_p10 = por %p841_p8, %p840_p5 }
  0x22   : > { %p836_p9 = pneg %p835_p13 }
  0x24   : > { %p843_p0 = pnand %p842_p10, %p836_p9 }
  0x26   : > { %846 = shalt.err (!%p843_p0)
}
  0x27   : > { %s980_s13 = smov 64   ;;  %s981_s14 = smov 4  }
  0x28   : > { %751 = dma.hbm_to_vmem [thread:$0]  (!%p1070_p12), %s1272_s0, 512, %s150_s28, [#allocation3], %s980_s13, %s980_s13, %s981_s14  }
  0x29   : > { %s982_s22 = smov [#allocation5]   ;;  %s847_s6 = scalar_lea.hbm %s1273_s1, 1024 }
  0x2a   : > { %s162_s24 = sshll.u32 %s982_s22, 4  ;;  %p848_p5 = scmp.ne.s32.totalorder %s1273_s1, %s847_s6  ;;  %s163_s24 = int_to_ptr.vmem [resolvable:$true] %s162_s24 }
  0x2b   : > { %p854_p10 = scmp.lt.u32.totalorder %s847_s6, %s1273_s1 }
  0x2c   : > { %p850_p8 = pnand %p848_p5, %p821_p2 }
  0x2e   : > { %p851_p9 = pneg %p850_p8 }
  0x30   : > { %p856_p0 = pnand %p854_p10, %p851_p9 }
  0x32   : > { %859 = shalt.err (!%p856_p0)
}
  0x33   : > { %s860_s28 = scalar_lea.vmem %s163_s24, 1024  ;;  %p868_p4 = scmp.lt.s32.totalorder %s163_s24, %s163_s24 }
  0x34   : > { %p861_p1 = scmp.ne.s32.totalorder %s163_s24, %s860_s28  ;;  %p869_p7 = scmp.lt.s32.totalorder %s860_s28, %s860_s28 }
  0x36   : > { %p863_p3 = pnand %p861_p1, %p821_p2  ;;  %p870_p11 = por %p869_p7, %p868_p4 }
  0x38   : > { %p864_p6 = pneg %p863_p3 }
  0x3a   : > { %p871_p13 = pnand %p870_p11, %p864_p6 }
  0x3c   : > { %874 = shalt.err (!%p871_p13)
}
  0x3d   : > { %s983_s11 = smov 128   ;;  %s984_s12 = smov 8  }
  0x3e   : > { %754 = dma.hbm_to_vmem [thread:$0]  (!%p1070_p12), %s1273_s1, 1024, %s163_s24, [#allocation6], %s983_s11, %s983_s11, %s984_s12  }
  0x3f   : > { %s176_s22 = sand.u32 1, %s977_s18   ;;  %s178_s27 = sand.u32 1, %s973_s17  }
  0x40   : > { %s644_s5 = sshll.u32 %s178_s27, 6  ;;  %s673_s6 = sshll.u32 %s977_s18, 10 }
  0x41   : > { %s1132_s9 = scalar_lea.hbm %s1274_s2, %s673_s6  ;;  %s180_s10 = scalar_lea.vmem [#allocation7], %s644_s5 }
  0x42   : > { %s187_s28 = sshll.u32 %s180_s10, 4  ;;  %s1136_s29 = scalar_lea.sflag [#allocation3], %s176_s22  ;;  %s1134_s28 = int_to_ptr.vmem [resolvable:$true] %s187_s28 }
  0x43   : > { %s875_s24 = scalar_lea.hbm %s1132_s9, 1024  ;;  %p1286_p2 = scmp.ne.s32.totalorder %s1285_s30, 0 }
  0x44   : > { %p876_p12 = scmp.ne.s32.totalorder %s1132_s9, %s875_s24  ;;  %s880_s12 = scalar_lea.hbm %s1274_s2, 2048 }
  0x45   : > { %p877_p5 = pneg %p1286_p2  ;;  %p881_p10 = scmp.lt.u32.totalorder %s1132_s9, %s1274_s2 }
  0x46   : > { %p882_p0 = scmp.lt.u32.totalorder %s880_s12, %s875_s24  ;;  %p884_p3 = scmp.lt.u32.totalorder %s875_s24, %s1132_s9 }
  0x47   : > { %p878_p8 = pnand %p877_p5, %p876_p12 }
  0x48   : > { %p883_p1 = por %p882_p0, %p881_p10 }
  0x49   : > { %p879_p9 = pneg %p878_p8 }
  0x4a   : > { %p885_p6 = por %p884_p3, %p883_p1 }
  0x4c   : > { %p886_p4 = pnand %p885_p6, %p879_p9 }
  0x4e   : > { %889 = shalt.err (!%p886_p4)
}
  0x4f   : > { %s890_s22 = scalar_lea.vmem %s1134_s28, 1024  ;;  %s985_s27 = smov [#allocation7]  }
  0x50   : > { %p891_p7 = scmp.ne.s32.totalorder %s1134_s28, %s890_s22  ;;  %s895_s5 = sshll.u32 %s985_s27, 4  ;;  %s896_s5 = int_to_ptr.vmem [resolvable:$false] %s895_s5 }
  0x51   : > { %s897_s6 = scalar_lea.vmem %s896_s5, 2048  ;;  %p898_p12 = scmp.lt.s32.totalorder %s1134_s28, %s896_s5 }
  0x52   : > { %p893_p11 = pnand %p891_p7, %p877_p5  ;;  %p899_p8 = scmp.lt.s32.totalorder %s897_s6, %s890_s22 }
  0x54   : > { %p894_p13 = pneg %p893_p11  ;;  %p900_p10 = por %p899_p8, %p898_p12 }
  0x56   : > { %p901_p0 = pnand %p900_p10, %p894_p13 }
  0x58   : > { %904 = shalt.err (!%p901_p0)
}
  0x59   : > { %758 = dma.hbm_to_vmem [thread:$0]  (!%p1286_p2), %s1132_s9, 1024, %s1134_s28, %s1136_s29, %s980_s13, %s980_s13, %s981_s14  }
  0x5a   : > { %p1287_p5 = scmp.ne.s32.totalorder %s1283_s26, 0 }
  0x5b   : > { %p1288_p9 = scmp.eq.s32.totalorder (!%p1287_p5), %s1033_s19, 0 }
  0x5c   : > { %205 = sbr.rel (%p1287_p5) target bundleno = 629 (0x275), region = 36 }
  0x63   : > { %948 = dma.done.wait (%p1288_p9), [#allocation3], 512   ;;  %p1289_p1 = pmov %p1288_p9 }
  0x65   : > { %950 = vsyncadd (%p1289_p1), [#allocation3], 4294966784  ;;  %p1290_p3 = pmov %p1289_p1 }
  0x66   : > { %p1291_p6 = pmov %p1289_p1 }
  0x67   : > { %952 = dma.done.wait (%p1290_p3), [#allocation6], 1024  }
  0x68   : > { %954 = vsyncadd (%p1291_p6), [#allocation6], 4294966272  ;;  %s215_s30 = sand.u32 1, %s1033_s19   ;;  %s217_s13 = sand.u32 1, %s969_s16  }
  0x69   : > { %s650_s14 = sshll.u32 %s217_s13, 6  ;;  %s216_s26 = scalar_lea.sflag [#allocation3], %s215_s30 }
  0x6a   : > { %s1179_s7 = scalar_lea.vmem [#allocation7], %s650_s14  ;;  %p1292_p2 = scmp.ne.s32.totalorder %s1282_s25, 0 }
  0x6c   : > { %956 = dma.done.wait (%p1292_p2), %s216_s26, 1024  }
  0x6d   : > { %958 = vsyncadd (%p1292_p2), %s216_s26, 4294966272  ;;  %p242_p4 = scmp.lt.s32.totalorder %s1033_s19, 1  ;;  %p1293_p7 = scmp.ne.s32.totalorder %s1033_s19, 0 }
  0x6e   : > { %v250_v0 = vld [vmem:[#allocation5] sm:$0xff] (!%p1293_p7)  ;;  %v251_v1 = vld [vmem:[#allocation5 + $0x8] sm:$0xff] (!%p1293_p7)  ;;  %v252_v2 = vld [vmem:[#allocation5 + $0x10] sm:$0xff] (!%p1293_p7) }
  0x6f   : > { %s1189_s8 = scalar_select %p242_p4, %s1033_s19, 1 }
  0x70   : > { %249 = sbr.rel (%p1293_p7) target bundleno = 119 (0x77), region = 52  ;;  %258 = vst [vmem:[#allocation8] sm:$0xff] (!%p1293_p7), %v250_v0  ;;  %259 = vst [vmem:[#allocation8 + $0x8] sm:$0xff] (!%p1293_p7), %v251_v1  ;;  %v253_v3 = vld [vmem:[#allocation5 + $0x18] sm:$0xff] (!%p1293_p7)  ;;  %v254_v4 = vld [vmem:[#allocation5 + $0x20] sm:$0xff] (!%p1293_p7) }
  0x71   : > { %s244_s28 = scalar_lea.vmem %s1275_s3, %s1189_s8  ;;  %260 = vst [vmem:[#allocation8 + $0x10] sm:$0xff] (!%p1293_p7), %v252_v2  ;;  %v255_v5 = vld [vmem:[#allocation5 + $0x28] sm:$0xff] (!%p1293_p7)  ;;  %261 = vst [vmem:[#allocation8 + $0x18] sm:$0xff] (!%p1293_p7), %v253_v3  ;;  %v256_v6 = vld [vmem:[#allocation5 + $0x30] sm:$0xff] (!%p1293_p7) }
  0x72   : > { %262 = vst [vmem:[#allocation8 + $0x20] sm:$0xff] (!%p1293_p7), %v254_v4  ;;  %263 = vst [vmem:[#allocation8 + $0x28] sm:$0xff] (!%p1293_p7), %v255_v5  ;;  %v257_v7 = vld [vmem:[#allocation5 + $0x38] sm:$0xff] (!%p1293_p7) }
  0x73   : > { %264 = vst [vmem:[#allocation8 + $0x30] sm:$0xff] (!%p1293_p7), %v256_v6  ;;  %265 = vst [vmem:[#allocation8 + $0x38] sm:$0xff] (!%p1293_p7), %v257_v7 }
  0x77 PF: > { %v807_v8 = vld [vmem:[%s1179_s7] sm:$0xff]   ;;  %v808_v9 = vld [vmem:[%s1179_s7 + $0x8] sm:$0xff]   ;;  %v809_v10 = vld [vmem:[%s1179_s7 + $0x10] sm:$0xff]   ;;  %vm446_vm0 = vcmask 523264   ;;  %s533_s25 = scalar_select %p242_p4, 1, 0 }
  0x78   : > { %694 = vmatprep.subr.bf16.mxu0 %v807_v8  ;;  %v810_v11 = vld [vmem:[%s1179_s7 + $0x18] sm:$0xff]   ;;  %v266_v12 = vld [vmem:[#allocation8] sm:$0xff]  ;;  %v267_v13 = vld [vmem:[#allocation8 + $0x8] sm:$0xff]  ;;  %s986_s18 = smov [#allocation8]   ;;  %p764_p11 = scmp.eq.s32.totalorder %s1033_s19, 1 }
  0x79   : > { %695 = vmatpush3.bf16.msra.mxu0 %v807_v8  ;;  %v274_v14 = vpack.c.bf16 %v267_v13, %v266_v12  ;;  %v811_v15 = vld [vmem:[%s1179_s7 + $0x20] sm:$0xff]   ;;  %v812_v16 = vld [vmem:[%s1179_s7 + $0x28] sm:$0xff]   ;;  %v813_v17 = vld [vmem:[%s1179_s7 + $0x30] sm:$0xff]   ;;  %v534_v45 = vstv %s533_s25  ;;  %s558_s11 = sshll.u32 %s986_s18, 4  ;;  %s559_s11 = int_to_ptr.vmem [resolvable:$true] %s558_s11 }
  0x7a   : > { %696 = vmatprep.subr.bf16.mxu0 %v808_v9  ;;  %v814_v18 = vld [vmem:[%s1179_s7 + $0x38] sm:$0xff]   ;;  %v268_v19 = vld [vmem:[#allocation8 + $0x10] sm:$0xff]  ;;  %v270_v21 = vld [vmem:[#allocation8 + $0x20] sm:$0xff]  ;;  %vm1216_vm1 = vcmp.eq.s32.totalorder %v534_v45, 1  ;;  %s905_s12 = scalar_lea.vmem %s559_s11, 1024  ;;  %p912_p10 = scmp.lt.s32.totalorder %s559_s11, %s559_s11 }
  0x7b   : > { %710 = vmatprep.mubr.bf16.mxu0 %v274_v14  ;;  %v269_v20 = vld [vmem:[#allocation8 + $0x18] sm:$0xff]  ;;  %v271_v22 = vld [vmem:[#allocation8 + $0x28] sm:$0xff]  ;;  %v272_v25 = vld [vmem:[#allocation8 + $0x30] sm:$0xff]  ;;  %p906_p13 = scmp.ne.s32.totalorder %s559_s11, %s905_s12  ;;  %p913_p0 = scmp.lt.s32.totalorder %s905_s12, %s905_s12 }
  0x7c   : > { %v275_v23 = vpack.c.bf16 %v269_v20, %v268_v19  ;;  %v276_v24 = vpack.c.bf16 %v271_v22, %v270_v21  ;;  %v273_v26 = vld [vmem:[#allocation8 + $0x38] sm:$0xff]  ;;  %v815_v28 = vld [vmem:[#allocation2] sm:$0xff]   ;;  %v816_v41 = vld [vmem:[#allocation2 + $0x8] sm:$0xff]  }
  0x7d   : > { %697 = vmatpush3.bf16.msra.mxu0 %v808_v9  ;;  %v277_v27 = vpack.c.bf16 %v273_v26, %v272_v25  ;;  %726 = vmatprep.mubr.msk.bf16.mxu1 %vm446_vm0, %v815_v28  ;;  %v817_v42 = vld [vmem:[#allocation2 + $0x10] sm:$0xff]   ;;  %v818_v43 = vld [vmem:[#allocation2 + $0x18] sm:$0xff]   ;;  %v660_v44 = vld [vmem:[%s244_s28] ss:$0 sm:$0xff]  ;;  %p907_p12 = pnand %p906_p13, %p764_p11  ;;  %p914_p5 = por %p913_p0, %p912_p10 }
  0x7e   : > { %698 = vmatprep.subr.bf16.mxu0 %v809_v10 }
  0x7f   : > { %p908_p8 = pneg %p907_p12 }
  0x81   : > { %699 = vmatpush3.bf16.msra.mxu0 %v809_v10  ;;  %p915_p9 = pnand %p914_p5, %p908_p8 }
  0x82   : > { %700 = vmatprep.subr.bf16.mxu0 %v810_v11 }
  0x85   : > { %701 = vmatpush3.bf16.msra.mxu0 %v810_v11 }
  0x86   : > { %702 = vmatprep.subr.bf16.mxu0 %v811_v15 }
  0x89   : > { %703 = vmatpush3.bf16.msra.mxu0 %v811_v15 }
  0x8a   : > { %704 = vmatprep.subr.bf16.mxu0 %v812_v16 }
  0x8d   : > { %705 = vmatpush3.bf16.msra.mxu0 %v812_v16 }
  0x8e   : > { %706 = vmatprep.subr.bf16.mxu0 %v813_v17 }
  0x91   : > { %707 = vmatpush3.bf16.msra.mxu0 %v813_v17 }
  0x92   : > { %708 = vmatprep.subr.bf16.mxu0 %v814_v18 }
  0x95   : > { %709 = vmatpush3.bf16.msra.mxu0 %v814_v18 }
  0x98   : > { %711 = vmatmul.mubr.bf16.vlgmr.msra.gmra.mrb[0].mxu0 %v275_v23 }
  0x99   : > { %714 = vmatprep.mubr.bf16.mxu0 %v276_v24 }
  0xa0   : > { %715 = vmatmul.mubr.bf16.gmra.mrb[4].mxu0 %v277_v27 }
 0x16b   : > { %v712_v29 = vpop.f32.mrb[0].mxu0 }
 0x16c   : > { %v376_v30 = vpop.f32.mrb[1].mxu0 }
 0x16d   : > { %v713_v31 = vpop.f32.mrb[2].mxu0 }
 0x16e   : > { %v416_v32 = vpack.c.bf16 %v713_v31, %v712_v29  ;;  %v379_v33 = vpop.f32.mrb[3].mxu0 }
 0x16f   : > { %v415_v34 = vpack.c.bf16 %v379_v33, %v376_v30 }
 0x171   : > { %718 = vmatprep.subr.bf16.mxu1 %v415_v34 }
 0x172   : > { %719 = vmatpush3.bf16.msra.mxu1 %v415_v34 }
 0x173   : > { %v716_v35 = vpop.f32.mrb[4].mxu0  ;;  %720 = vmatprep.subr.bf16.mxu1 %v416_v32 }
 0x174   : > { %v392_v36 = vpop.f32.mrb[5].mxu0 }
 0x175   : > { %v717_v37 = vpop.f32.mrb[6].mxu0 }
 0x176   : > { %v418_v38 = vpack.c.bf16 %v717_v37, %v716_v35  ;;  %v395_v39 = vpop.f32.mrb[7].mxu0  ;;  %721 = vmatpush3.bf16.msra.mxu1 %v416_v32 }
 0x177   : > { %v417_v40 = vpack.c.bf16 %v395_v39, %v392_v36 }
 0x179   : > { %722 = vmatprep.subr.bf16.mxu1 %v417_v40 }
 0x17a   : > { %723 = vmatpush3.bf16.msra.mxu1 %v417_v40 }
 0x17b   : > { %724 = vmatprep.subr.bf16.mxu1 %v418_v38 }
 0x17e   : > { %725 = vmatpush3.bf16.msra.mxu1 %v418_v38 }
 0x181   : > { %727 = vmatmul.mubr.msk.bf16.vlgmr.msra.gmra.mrb[0].mxu1 %vm446_vm0, %v816_v41 }
 0x182   : > { %730 = vmatprep.mubr.msk.bf16.mxu1 %vm446_vm0, %v817_v42 }
 0x189   : > { %731 = vmatmul.mubr.msk.bf16.gmra.mrb[4].mxu1 %vm446_vm0, %v818_v43 }
 0x254   : > { %v728_v46 = vpop.f32.mrb[0].mxu1 }
 0x255   : > { %v502_v47 = vadd.f32 %v728_v46, %v660_v44  ;;  %v493_v48 = vpop.f32.mrb[1].mxu1 }
 0x256   : > { %v494_v50 = vadd.f32 %v660_v44, %v493_v48  ;;  %v729_v51 = vpop.f32.mrb[2].mxu1 }
 0x257   : > { %v527_v52 = vmax.f32 %v502_v47, 0.0  ;;  %v505_v53 = vadd.f32 %v729_v51, %v660_v44  ;;  %v496_v54 = vpop.f32.mrb[3].mxu1 }
 0x258   : > { %v525_v55 = vmax.f32 %v494_v50, 0.0  ;;  %v497_v56 = vadd.f32 %v660_v44, %v496_v54 }
 0x259   : > { %v538_v57 = vsel %vm1216_vm1, %v527_v52, %v502_v47  ;;  %v528_v58 = vmax.f32 %v505_v53, 0.0 }
 0x25a   : > { %546 = vst [vmem:[#allocation8 + $0x10] sm:$0xff] %v538_v57  ;;  %v536_v59 = vsel %vm1216_vm1, %v525_v55, %v494_v50  ;;  %v526_v60 = vmax.f32 %v497_v56, 0.0 }
 0x25b   : > { %544 = vst [vmem:[#allocation8] sm:$0xff] %v536_v59  ;;  %v539_v61 = vsel %vm1216_vm1, %v528_v58, %v505_v53 }
 0x25c   : > { %547 = vst [vmem:[#allocation8 + $0x18] sm:$0xff] %v539_v61  ;;  %v537_v62 = vsel %vm1216_vm1, %v526_v60, %v497_v56  ;;  %v732_v63 = vpop.f32.mrb[4].mxu1 }
 0x25d   : > { %545 = vst [vmem:[#allocation8 + $0x8] sm:$0xff] %v537_v62  ;;  %v518_v0 = vadd.f32 %v732_v63, %v660_v44  ;;  %v509_v1 = vpop.f32.mrb[5].mxu1 }
 0x25e   : > { %v510_v2 = vadd.f32 %v660_v44, %v509_v1  ;;  %v733_v3 = vpop.f32.mrb[6].mxu1 }
 0x25f   : > { %v531_v4 = vmax.f32 %v518_v0, 0.0  ;;  %v521_v5 = vadd.f32 %v733_v3, %v660_v44  ;;  %v512_v6 = vpop.f32.mrb[7].mxu1 }
 0x260   : > { %v529_v7 = vmax.f32 %v510_v2, 0.0  ;;  %v513_v8 = vadd.f32 %v660_v44, %v512_v6 }
 0x261   : > { %v542_v9 = vsel %vm1216_vm1, %v531_v4, %v518_v0  ;;  %v532_v10 = vmax.f32 %v521_v5, 0.0 }
 0x262   : > { %550 = vst [vmem:[#allocation8 + $0x30] sm:$0xff] %v542_v9  ;;  %v540_v11 = vsel %vm1216_vm1, %v529_v7, %v510_v2  ;;  %v530_v12 = vmax.f32 %v513_v8, 0.0 }
 0x263   : > { %548 = vst [vmem:[#allocation8 + $0x20] sm:$0xff] %v540_v11  ;;  %v543_v13 = vsel %vm1216_vm1, %v532_v10, %v521_v5 }
 0x264   : > { %551 = vst [vmem:[#allocation8 + $0x38] sm:$0xff] %v543_v13  ;;  %v541_v14 = vsel %vm1216_vm1, %v530_v12, %v513_v8 }
 0x265   : > { %549 = vst [vmem:[#allocation8 + $0x28] sm:$0xff] %v541_v14 }
 0x266   : > { %918 = shalt.err (!%p915_p9)
}
 0x267   : > { %s919_s22 = scalar_lea.hbm %s1276_s4, 1024 }
 0x268   : > { %p920_p1 = scmp.ne.s32.totalorder %s1276_s4, %s919_s22  ;;  %p925_p2 = scmp.lt.u32.totalorder %s919_s22, %s1276_s4 }
 0x26a   : > { %p921_p3 = pnand %p920_p1, %p764_p11 }
 0x26c   : > { %p922_p6 = pneg %p921_p3 }
 0x26e   : > { %p927_p4 = pnand %p925_p2, %p922_p6 }
 0x270   : > { %930 = shalt.err (!%p927_p4)
}
 0x271   : > { %s987_s13 = smov 128   ;;  %s988_s14 = smov 8  }
 0x272   : > { %745 = dma.vmem_to_hbm [thread:$0]  (%p764_p11), %s559_s11, 1024, %s1276_s4, [#allocation4], %s987_s13, %s987_s13, %s988_s14  }
 0x273   : > { %960 = dma.done.wait (%p764_p11), [#allocation4], 1024  }
 0x274   : > { %962 = vsyncadd (%p764_p11), [#allocation4], 4294966272 }
 0x275 PF: > { %p14_p7 = scmp.ge.s32.totalorder %s1036_s20, 4   ;;  %s1296_s15 = smov %s969_s16 }
 0x276   : > { %s1297_s16 = smov %s973_s17  ;;  %s1298_s17 = smov %s1046_s23 }
 0x277   : > { %s1299_s18 = smov %s1036_s20  ;;  %16 = sbr.rel (!%p14_p7) target bundleno = 4 (0x4), region = 87 }
 0x27e   :  { %574 = vsyncpa [#allocation3], 1 }
 0x27f   :  { %576 = vsyncpa [#allocation3 + $0x1], 1 }
 0x280   :  { %577 = vsyncpa [#allocation6], 1 }
 0x281   :  { %578 = vsyncpa [#allocation4], 1 }
 0x282   :  { %580 = vsyncpa [#allocation4 + $0x1], 1 }

</bundles_post_ra>
